<compile_context>
chip_gen: v7x
topology: tpu7x:2x2x1
jax: 0.10.0
libtpu: 0.0.40
codegen_flags: <defaults>
</compile_context>

<pallas_src>
import functools
import math

import jax
import jax.numpy as jnp
from jax.experimental import pallas as pl
from jax.experimental.pallas import tpu as pltpu


def _sigmoid_bin_kernel(pred_ref, out_ref, *, reg_scale, step, vmin, vmax,
                        bin_count, bin_start, use_fw_regression):
    # pred_ref block: (L, T) with L = bin_count + 1 sublane rows, T lanes
    # (T a multiple of 128 -> fully dense, unmasked loads/stores).
    p = pred_ref[...].astype(jnp.float32)                      # (L, T)

    row = jax.lax.broadcasted_iota(jnp.int32, p.shape, 0)      # sublane index
    is_bin = row >= 1                                          # rows 1..bin_count are bin logits
    binvals = jnp.where(is_bin, p, -jnp.inf)                   # (L, T)

    # argmax over the bin rows with first-occurrence tie-breaking (torch.max):
    row_max = jnp.max(binvals, axis=0, keepdims=True)          # (1, T) sublane reduce
    cand = jnp.where(jnp.logical_and(is_bin, binvals == row_max),
                     (row - 1).astype(jnp.float32),
                     float(bin_count))
    bin_idx = jnp.min(cand, axis=0, keepdims=True)             # (1, T), first match
    # all-NaN bin rows never match row_max -> would read out of range with the
    # affine formula; clamp to a valid index (reference argmax picks 0).
    bin_idx = jnp.where(bin_idx >= bin_count, 0.0, bin_idx)

    # bins[i] = bin_start + step * i  -> affine in index, no gather / bins input.
    bin_bias = bin_start + step * bin_idx                      # (1, T)

    if use_fw_regression:
        pred_reg = (p[0:1, :] * reg_scale - reg_scale * 0.5) * step
        result = pred_reg + bin_bias
    else:
        result = bin_bias

    out_ref[...] = jnp.clip(result, vmin, vmax).astype(out_ref.dtype)


class SigmoidBinPallas:
    """JAX/Pallas port of SigmoidBin (forward pass only)."""

    def __init__(self, bin_count=10, min=0.0, max=1.0, reg_scale=2.0,
                 use_fw_regression=True):
        self.bin_count = bin_count
        self.length = bin_count + 1
        self.min = float(min)
        self.max = float(max)
        self.scale = float(max - min)
        self.reg_scale = float(reg_scale)
        self.step = self.scale / bin_count
        self.use_fw_regression = use_fw_regression
        self.bin_start = self.min + self.scale / 2.0 / bin_count
        # matches torch.range(start, end + 1e-4, step): bin_count inclusive bins
        self.bins = (self.bin_start
                     + self.step * jnp.arange(bin_count)).astype(jnp.float32)
        # TODO(synk): training_loss (BCEWithLogitsLoss / MSELoss) not implemented;
        # forward pass only.

    def get_length(self):
        return self.length

    def forward(self, pred, tile_lanes=8192):
        assert pred.shape[-1] == self.length, (
            "pred.shape[-1]=%d is not equal to self.length=%d"
            % (pred.shape[-1], self.length))
        lead_shape = pred.shape[:-1]
        n = math.prod(lead_shape)

        # Transposed (L, N) layout: N on the lane axis -> lane-dense input and
        # output blocks, argmax over sublanes. Kept in the native dtype; the
        # kernel casts to f32 on-chip (halves HBM traffic for bf16 inputs).
        pred2 = pred.reshape(n, self.length).T                  # (L, N)

        # Tile sizing: multiple of 128 lanes, shrunk for tiny inputs. With
        # default 8192 lanes the double-buffered input block is 16*8192*4 B
        # (~0.5 MiB) per buffer -> safe under the scoped-VMEM default on
        # v5e (16 MiB), v6e (32 MiB) and v7x (32 MiB of 64 MiB physical),
        # while keeping the parallel grid multi-step for large N so both
        # v7x TensorCores get work.
        tile = min(int(tile_lanes), pl.cdiv(max(n, 1), 128) * 128)
        tile = max(128, (tile // 128) * 128)
        n_pad = pl.cdiv(n, tile) * tile
        if n_pad != n:
            pred2 = jnp.pad(pred2, ((0, 0), (0, n_pad - n)))

        kernel = functools.partial(
            _sigmoid_bin_kernel,
            reg_scale=self.reg_scale,
            step=self.step,
            vmin=self.min,
            vmax=self.max,
            bin_count=self.bin_count,
            bin_start=self.bin_start,
            use_fw_regression=self.use_fw_regression,
        )

        out = pl.pallas_call(
            kernel,
            out_shape=jax.ShapeDtypeStruct((1, n_pad), pred.dtype),
            grid_spec=pltpu.PrefetchScalarGridSpec(
                num_scalar_prefetch=0,
                grid=(n_pad // tile,),
                in_specs=[pl.BlockSpec((self.length, tile), lambda i: (0, i))],
                out_specs=pl.BlockSpec((1, tile), lambda i: (0, i)),
            ),
            compiler_params=pltpu.CompilerParams(
                dimension_semantics=("parallel",)),
        )(pred2)

        return out[0, :n].reshape(lead_shape)


def _reference_forward(mod, pred):
    pred = pred.astype(jnp.float32)
    pred_reg = (pred[..., 0] * mod.reg_scale - mod.reg_scale / 2.0) * mod.step
    pred_bin = pred[..., 1:1 + mod.bin_count]
    bin_idx = jnp.argmax(pred_bin, axis=-1)
    bin_bias = mod.bins[bin_idx]
    result = pred_reg + bin_bias if mod.use_fw_regression else bin_bias
    return jnp.clip(result, mod.min, mod.max)


if __name__ == "__main__":
    mod = SigmoidBinPallas(bin_count=10, min=0.0, max=1.0, reg_scale=2.0)

    key = jax.random.PRNGKey(0)
    k1, k2 = jax.random.split(key)

    # small shape: leading dims (2, 8, 8), trailing dim = length = 11
    pred = jax.random.normal(k1, (2, 8, 8, mod.get_length()), dtype=jnp.float32)
    out = jax.block_until_ready(mod.forward(pred))
    ref = _reference_forward(mod, pred)
    assert out.shape == pred.shape[:-1]
    assert jnp.max(jnp.abs(out - ref)) < 1e-5

    # ragged leading size (exercises the pad / cdiv grid path)
    pred_small = jax.random.normal(k2, (3, 7, mod.get_length()), dtype=jnp.float32)
    out_small = jax.block_until_ready(mod.forward(pred_small))
    ref_small = _reference_forward(mod, pred_small)
    assert out_small.shape == pred_small.shape[:-1]
    assert jnp.max(jnp.abs(out_small - ref_small)) < 1e-5

    print("KERNEL_OK")
</pallas_src>

<mosaic_0001>
module attributes {stable_mosaic.version = 11 : i64} {
  func.func @_sigmoid_bin_kernel(%arg0: i32, %arg1: memref<11x128xf32, #tpu.memory_space<vmem>>, %arg2: memref<1x128xf32, #tpu.memory_space<vmem>>) attributes {dimension_semantics = [#tpu.dimension_semantics<parallel>], iteration_bounds = array<i64: 1>, scalar_prefetch = 0 : i64, scratch_operands = 0 : i64, tpu.core_type = #tpu.core_type<tc>, window_params = [{transform_indices = @transform_0, window_bounds = array<i64: 11, 128>}, {transform_indices = @transform_1, window_bounds = array<i64: 1, 128>}]} {
    %c0 = arith.constant 0 : index
    %c0_0 = arith.constant 0 : index
    %0 = vector.load %arg1[%c0, %c0_0] : memref<11x128xf32, #tpu.memory_space<vmem>>, vector<11x128xf32>
    %1 = tpu.iota {dimensions = array<i32: 0>} : vector<11x128xi32>
    %c1_i32 = arith.constant 1 : i32
    %2 = vector.broadcast %c1_i32 : i32 to vector<11x128xi32>
    %3 = arith.cmpi sge, %1, %2 : vector<11x128xi32>
    %cst = arith.constant 0xFF800000 : f32
    %4 = vector.broadcast %cst : f32 to vector<11x128xf32>
    %5 = arith.select %3, %0, %4 : vector<11x128xi1>, vector<11x128xf32>
    %cst_1 = arith.constant dense<0xFF800000> : vector<128xf32>
    %6 = vector.multi_reduction <maximumf>, %5, %cst_1 [0] : vector<11x128xf32> to vector<128xf32>
    %7 = vector.shape_cast %6 : vector<128xf32> to vector<1x128xf32>
    %8 = vector.broadcast %7 : vector<1x128xf32> to vector<11x128xf32>
    %9 = arith.cmpf oeq, %5, %8 : vector<11x128xf32>
    %10 = arith.andi %3, %9 : vector<11x128xi1>
    %c1_i32_2 = arith.constant 1 : i32
    %11 = vector.broadcast %c1_i32_2 : i32 to vector<11x128xi32>
    %12 = arith.subi %1, %11 : vector<11x128xi32>
    %13 = arith.sitofp %12 : vector<11x128xi32> to vector<11x128xf32>
    %cst_3 = arith.constant 1.000000e+01 : f32
    %14 = vector.broadcast %cst_3 : f32 to vector<11x128xf32>
    %15 = arith.select %10, %13, %14 : vector<11x128xi1>, vector<11x128xf32>
    %cst_4 = arith.constant dense<0x7F800000> : vector<128xf32>
    %16 = vector.multi_reduction <minimumf>, %15, %cst_4 [0] : vector<11x128xf32> to vector<128xf32>
    %17 = vector.shape_cast %16 : vector<128xf32> to vector<1x128xf32>
    %cst_5 = arith.constant 1.000000e+01 : f32
    %18 = vector.broadcast %cst_5 : f32 to vector<1x128xf32>
    %19 = arith.cmpf oge, %17, %18 : vector<1x128xf32>
    %cst_6 = arith.constant 0.000000e+00 : f32
    %20 = vector.broadcast %cst_6 : f32 to vector<1x128xf32>
    %21 = arith.select %19, %20, %17 : vector<1x128xi1>, vector<1x128xf32>
    %cst_7 = arith.constant 1.000000e-01 : f32
    %22 = vector.broadcast %cst_7 : f32 to vector<1x128xf32>
    %23 = arith.mulf %22, %21 : vector<1x128xf32>
    %cst_8 = arith.constant 5.000000e-02 : f32
    %24 = vector.broadcast %cst_8 : f32 to vector<1x128xf32>
    %25 = arith.addf %24, %23 : vector<1x128xf32>
    %26 = vector.extract_strided_slice %0 {offsets = [0, 0], sizes = [1, 128], strides = [1, 1]} : vector<11x128xf32> to vector<1x128xf32>
    %cst_9 = arith.constant 2.000000e+00 : f32
    %27 = vector.broadcast %cst_9 : f32 to vector<1x128xf32>
    %28 = arith.mulf %26, %27 : vector<1x128xf32>
    %cst_10 = arith.constant 1.000000e+00 : f32
    %29 = vector.broadcast %cst_10 : f32 to vector<1x128xf32>
    %30 = arith.subf %28, %29 : vector<1x128xf32>
    %cst_11 = arith.constant 1.000000e-01 : f32
    %31 = vector.broadcast %cst_11 : f32 to vector<1x128xf32>
    %32 = arith.mulf %30, %31 : vector<1x128xf32>
    %33 = arith.addf %32, %25 : vector<1x128xf32>
    %cst_12 = arith.constant 0.000000e+00 : f32
    %cst_13 = arith.constant 1.000000e+00 : f32
    %34 = vector.broadcast %cst_12 : f32 to vector<1x128xf32>
    %35 = arith.maximumf %34, %33 : vector<1x128xf32>
    %36 = vector.broadcast %cst_13 : f32 to vector<1x128xf32>
    %37 = arith.minimumf %36, %35 : vector<1x128xf32>
    %c0_14 = arith.constant 0 : index
    %c0_15 = arith.constant 0 : index
    %38 = vector.load %arg2[%c0_14, %c0_15] : memref<1x128xf32, #tpu.memory_space<vmem>>, vector<1x128xf32>
    tpu.vector_store %arg2[%c0_14, %c0_15], %37 {strides = array<i32>} : memref<1x128xf32, #tpu.memory_space<vmem>>, vector<1x128xf32>,
    return
  }
  func.func @transform_0(%arg0: i32) -> (i32, i32) {
    %c0_i32 = arith.constant 0 : i32
    %c0_i32_0 = arith.constant 0 : i32
    return %c0_i32, %arg0 : i32, i32
  }
  func.func @transform_1(%arg0: i32) -> (i32, i32) {
    %c0_i32 = arith.constant 0 : i32
    %c0_i32_0 = arith.constant 0 : i32
    return %c0_i32, %arg0 : i32, i32
  }
}

</mosaic_0001>

<bundles_post_ra>
// kernel: tpu_custom_call.1
= control target key start
LH: loop header
LB: loop body
LE: loop exit
PB: predicated region body
PF: predicated region fallthrough
CT: control target
= control target key end

     0   :  { %6 = vsyncpa [#allocation3], 0  ;;  %s182_s0 = inlined_call_operand.hbm [shape: f32[11,128], index: 0, kind: input, shape index: {}]   ;;  %s183_s1 = inlined_call_operand.hbm [shape: f32[1,128], index: 1, kind: output, shape index: {}]  }
   0x1   :  { %7 = vsyncpa [#allocation4], 0  ;;  %s140_s6 = smov [#allocation2]   ;;  %s92_s10 = scalar_lea.hbm %s182_s0, 256 }
   0x2   :  { %s13_s7 = sshll.u32 %s140_s6, 4  ;;  %p93_p0 = scmp.ne.s32.totalorder %s182_s0, %s92_s10  ;;  %s14_s7 = int_to_ptr.vmem [resolvable:$true] %s13_s7 }
   0x3   :  { %p96_p1 = scmp.lt.u32.totalorder %s92_s10, %s182_s0 }
   0x5   :  { %p98_p2 = pnand %p96_p1, %p93_p0 }
   0x7   :  { %101 = shalt.err (!%p98_p2)
}
   0x8   :  { %s102_s15 = scalar_lea.vmem %s14_s7, 256  ;;  %p107_p4 = scmp.lt.s32.totalorder %s14_s7, %s14_s7 }
   0x9   :  { %p103_p3 = scmp.ne.s32.totalorder %s14_s7, %s102_s15  ;;  %p108_p5 = scmp.lt.s32.totalorder %s102_s15, %s102_s15 }
   0xb   :  { %p109_p6 = por %p108_p5, %p107_p4 }
   0xd   :  { %p110_p7 = pnand %p109_p6, %p103_p3 }
   0xf   :  { %113 = shalt.err (!%p110_p7)
}
  0x10   :  { %s141_s16 = smov 128   ;;  %s142_s17 = smov 8  }
  0x11   :  { %19 = dma.hbm_to_vmem [thread:$0]  %s182_s0, 256, %s14_s7, [#allocation3], %s141_s16, %s141_s16, %s142_s17  }
  0x12   :  { %136 = dma.done.wait [#allocation3], 256  }
  0x13   :  { %137 = vsyncadd [#allocation3], 4294967040  ;;  %v25_v0 = vlaneseq  ;;  %vm32_vm1 = vcmask 1042432   ;;  %v23_v2 = vld [vmem:[#allocation2] sm:$0xff]  ;;  %v24_v3 = vld [vmem:[#allocation2 + $0x8] sm:$0x7] }
  0x14   :  { %v33_v5 = vsel %vm32_vm1, %v24_v3, -inf  ;;  %v63_v26 = vmul.f32 2.0, %v23_v2  ;;  %s143_s0 = smov [#allocation5]  }
  0x15   :  { %v26_v1 = vshrl.u32 %v25_v0, 7  ;;  %s76_s20 = sshll.u32 %s143_s0, 4  ;;  %s77_s20 = int_to_ptr.vmem [resolvable:$true] %s76_s20 }
  0x16   :  { %v87_v29 = vadd.f32 -1.0, %v63_v26  ;;  %s114_s21 = scalar_lea.vmem %s77_s20, 16  ;;  %s118_s22 = scalar_lea.vmem %s77_s20, 32 }
  0x17   :  { %vm28_vm0 = vcmp.ge.s32.totalorder %v26_v1, 1  ;;  %v27_v8 = vadd.s32 8, %v26_v1  ;;  %v85_v13 = vadd.s32 4294967295, %v26_v1  ;;  %p115_p8 = scmp.ne.s32.totalorder %s77_s20, %s114_s21  ;;  %p119_p9 = scmp.lt.s32.totalorder %s77_s20, %s77_s20 }
  0x18   :  { %v30_v4 = vsel %vm28_vm0, %v23_v2, -inf  ;;  %v65_v32 = vmul.f32 0.1, %v87_v29  ;;  %p120_p10 = scmp.lt.s32.totalorder %s118_s22, %s114_s21 }
  0x19   :  { %v34_v6 = vmax.f32 %v30_v4, %v33_v5  ;;  %v86_v11 = vadd.s32 4294967295, %v27_v8  ;;  %v47_v17 = vcvt.s32.f32 %v85_v13 }
  0x1a   :  { %p121_p11 = por %p120_p10, %p119_p9 }
  0x1b   :  { %v35_v7 = vrot.slane %v34_v6, 4  ;;  %v48_v15 = vcvt.s32.f32 %v86_v11 }
  0x1c   :  { %p122_p12 = pnand %p121_p11, %p115_p8 }
  0x1d   :  { %v36_v9 = vmax.f32 %v34_v6, %v35_v7 }
  0x1f   :  { %v37_v10 = vrot.slane %v36_v9, 2 }
  0x21   :  { %v38_v12 = vmax.f32 %v36_v9, %v37_v10 }
  0x23   :  { %v39_v14 = vrot.slane %v38_v12, 1 }
  0x25   :  { %v40_v16 = vmax.f32 %v38_v12, %v39_v14 }
  0x27   :  { %vm41_vm2 = vcmp.eq.f32.partialorder %v30_v4, %v40_v16  ;;  %vm42_vm3 = vcmp.eq.f32.partialorder %v24_v3, %v40_v16 }
  0x28   :  { %vm43_vm4 = vmand %vm28_vm0, %vm41_vm2  ;;  %v50_v18 = vsel %vm42_vm3, %v48_v15, 10.0 }
  0x29   :  { %v49_v19 = vsel %vm43_vm4, %v47_v17, 10.0  ;;  %v51_v20 = vsel %vm32_vm1, %v50_v18, inf }
  0x2a   :  { %v52_v21 = vmin.f32 %v49_v19, %v51_v20 }
  0x2c   :  { %v53_v22 = vrot.slane %v52_v21, 4 }
  0x2e   :  { %v54_v23 = vmin.f32 %v52_v21, %v53_v22 }
  0x30   :  { %v55_v24 = vrot.slane %v54_v23, 2 }
  0x32   :  { %v56_v25 = vmin.f32 %v54_v23, %v55_v24 }
  0x34   :  { %v57_v27 = vrot.slane %v56_v25, 1 }
  0x36   :  { %v58_v28 = vmin.f32 %v56_v25, %v57_v27 }
  0x38   :  { %vm59_vm5 = vcmp.ge.f32.partialorder %v58_v28, 10.0 }
  0x39   :  { %v60_v30 = vsel %vm59_vm5, 0.0, %v58_v28 }
  0x3a   :  { %v61_v31 = vmul.f32 0.1, %v60_v30 }
  0x3c   :  { %v62_v33 = vadd.f32 0.05, %v61_v31 }
  0x3e   :  { %v66_v34 = vadd.f32 %v65_v32, %v62_v33 }
  0x40   :  { %v67_v35 = vmax.f32 %v66_v34, 0.0 }
  0x42   :  { %v68_v36 = vmin.f32 %v67_v35, 1.0 }
  0x44   :  { %69 = vst [vmem:[#allocation5] sm:$0x1] %v68_v36 }
  0x45   :  { %125 = shalt.err (!%p122_p12)
}
  0x46   :  { %s126_s25 = scalar_lea.hbm %s183_s1, 16 }
  0x47   :  { %p127_p13 = scmp.ne.s32.totalorder %s183_s1, %s126_s25  ;;  %p130_p0 = scmp.lt.u32.totalorder %s126_s25, %s183_s1 }
  0x49   :  { %p132_p1 = pnand %p130_p0, %p127_p13 }
  0x4b   :  { %135 = shalt.err (!%p132_p1)
}
  0x4c   :  { %79 = dma.vmem_to_hbm [thread:$0]  %s77_s20, 16, %s183_s1, [#allocation4]  }
  0x4d   :  { %138 = dma.done.wait [#allocation4], 16  }
  0x4e   :  { %139 = vsyncadd [#allocation4], 4294967280 }
  0x4f   :  { %83 = vsyncpa [#allocation3], 1 }
  0x50   :  { %84 = vsyncpa [#allocation4], 1 }

</bundles_post_ra>
